<compile_context>
chip_gen: v6e
topology: v6e:2x2x1
jax: 0.10.0
libtpu: 0.0.40
codegen_flags: <defaults>
</compile_context>

<pallas_src>
import jax
import jax.numpy as jnp
from jax.experimental import pallas as pl
from jax.experimental.pallas import tpu as pltpu

LANE = 128
SUBLANE = 8
# ~2 MiB per f32 block (1 MiB for bf16). in+out, double-buffered => <= 8 MiB.
TARGET_BLOCK_ELEMS = 512 * 1024


def _mish_kernel(x_ref, o_ref):
    # mish(x) = x * tanh(softplus(x)); PyTorch softplus threshold=20
    # (linear above it). Single-exp rewrite:
    #   e = exp(x);  tanh(log1p(e)) = e*(e+2) / (e*(e+2) + 2)
    x = x_ref[...].astype(jnp.float32)
    e = jnp.exp(jnp.minimum(x, 20.0))
    num = e * (e + 2.0)
    t = num / (num + 2.0)                      # exact divide: meets 1e-5 tol
    o_ref[...] = jnp.where(x > 20.0, x, x * t).astype(o_ref.dtype)


def mish(x, target_block_elems=TARGET_BLOCK_ELEMS):
    orig_shape = x.shape
    dtype = x.dtype
    n = x.size
    if n == 0:
        return x

    flat = x.reshape(-1)
    if n % LANE == 0:
        padded = flat                          # free reshape, no HBM copy
    else:
        # Rare path (non-lane-aligned tensor): one small pad copy.
        pad_to = n + (-n) % (SUBLANE * LANE)
        padded = jnp.pad(flat, (0, pad_to - n))
    np_ = padded.size

    # Prefer a wide (lane-dense) last dim: fewer, wider unmasked stores.
    width = LANE
    for w in (8 * LANE, 4 * LANE, 2 * LANE):
        if np_ % w == 0:
            width = w
            break
    rows = np_ // width
    x2d = padded.reshape(rows, width)

    # Row-block sized to ~target_block_elems, multiple of 8 sublanes.
    block_rows = (target_block_elems // width) // SUBLANE * SUBLANE
    block_rows = max(block_rows, SUBLANE)
    if block_rows >= rows:
        block_rows = rows                      # single full-extent block
    grid = (pl.cdiv(rows, block_rows),)        # partial last block masked by Pallas

    out2d = pl.pallas_call(
        _mish_kernel,
        out_shape=jax.ShapeDtypeStruct((rows, width), dtype),
        grid=grid,
        in_specs=[pl.BlockSpec((block_rows, width), lambda i: (i, 0))],
        out_specs=pl.BlockSpec((block_rows, width), lambda i: (i, 0)),
        compiler_params=pltpu.CompilerParams(
            dimension_semantics=("parallel",)),   # megacore split on v7x
    )(x2d)

    out_flat = out2d.reshape(-1)
    if out_flat.size != n:
        out_flat = out_flat[:n]
    return out_flat.reshape(orig_shape)


def _mish_ref(x):
    xf = x.astype(jnp.float32)
    sp = jnp.where(xf > 20.0, xf, jnp.log1p(jnp.exp(jnp.minimum(xf, 20.0))))
    return (xf * jnp.tanh(sp)).astype(x.dtype)


if __name__ == "__main__":
    key = jax.random.PRNGKey(0)
    # Small 3D-UNet-like activation tensor: (N, C, D, H, W)
    x = jax.random.normal(key, (2, 4, 8, 16, 16), dtype=jnp.float32) * 3.0
    y = mish(x)
    jax.block_until_ready(y)
    assert y.shape == x.shape and y.dtype == x.dtype
    assert jnp.allclose(y, _mish_ref(x), atol=1e-5, rtol=1e-5)

    # Multi-block grid with a partial (masked) last block.
    x2 = jax.random.normal(jax.random.PRNGKey(1), (2, 4, 10, 16, 16),
                           dtype=jnp.float32) * 3.0
    y2 = mish(x2, target_block_elems=8 * 1024)
    jax.block_until_ready(y2)
    assert jnp.allclose(y2, _mish_ref(x2), atol=1e-5, rtol=1e-5)

    # Non-lane-aligned (pad) fallback path.
    x3 = jax.random.normal(jax.random.PRNGKey(2), (1, 3, 5, 7, 9),
                           dtype=jnp.float32) * 3.0
    y3 = mish(x3)
    jax.block_until_ready(y3)
    assert jnp.allclose(y3, _mish_ref(x3), atol=1e-5, rtol=1e-5)

    # bf16 I/O (halves HBM traffic); compute stays f32 inside the kernel.
    xb = x.astype(jnp.bfloat16)
    yb = mish(xb)
    jax.block_until_ready(yb)
    assert yb.dtype == jnp.bfloat16
    assert jnp.allclose(yb.astype(jnp.float32),
                        _mish_ref(xb).astype(jnp.float32),
                        atol=2e-2, rtol=2e-2)

    print("KERNEL_OK")
</pallas_src>

<mosaic_0001>
module attributes {stable_mosaic.version = 11 : i64} {
  func.func @_mish_kernel(%arg0: i32, %arg1: memref<16x1024xf32, #tpu.memory_space<vmem>>, %arg2: memref<16x1024xf32, #tpu.memory_space<vmem>>) attributes {dimension_semantics = [#tpu.dimension_semantics<parallel>], iteration_bounds = array<i64: 1>, scalar_prefetch = 0 : i64, scratch_operands = 0 : i64, tpu.core_type = #tpu.core_type<tc>, window_params = [{transform_indices = @transform_0, window_bounds = array<i64: 16, 1024>}, {transform_indices = @transform_1, window_bounds = array<i64: 16, 1024>}]} {
    %c0 = arith.constant 0 : index
    %c0_0 = arith.constant 0 : index
    %0 = vector.load %arg1[%c0, %c0_0] : memref<16x1024xf32, #tpu.memory_space<vmem>>, vector<16x1024xf32>
    %cst = arith.constant 2.000000e+01 : f32
    %1 = vector.broadcast %cst : f32 to vector<16x1024xf32>
    %2 = arith.minimumf %0, %1 : vector<16x1024xf32>
    %3 = math.exp %2 : vector<16x1024xf32>
    %cst_1 = arith.constant 2.000000e+00 : f32
    %4 = vector.broadcast %cst_1 : f32 to vector<16x1024xf32>
    %5 = arith.addf %3, %4 : vector<16x1024xf32>
    %6 = arith.mulf %3, %5 : vector<16x1024xf32>
    %cst_2 = arith.constant 2.000000e+00 : f32
    %7 = vector.broadcast %cst_2 : f32 to vector<16x1024xf32>
    %8 = arith.addf %6, %7 : vector<16x1024xf32>
    %9 = arith.divf %6, %8 : vector<16x1024xf32>
    %cst_3 = arith.constant 2.000000e+01 : f32
    %10 = vector.broadcast %cst_3 : f32 to vector<16x1024xf32>
    %11 = arith.cmpf ogt, %0, %10 : vector<16x1024xf32>
    %12 = arith.mulf %0, %9 : vector<16x1024xf32>
    %13 = arith.select %11, %0, %12 : vector<16x1024xi1>, vector<16x1024xf32>
    %c0_4 = arith.constant 0 : index
    %c0_5 = arith.constant 0 : index
    %14 = vector.load %arg2[%c0_4, %c0_5] : memref<16x1024xf32, #tpu.memory_space<vmem>>, vector<16x1024xf32>
    tpu.vector_store %arg2[%c0_4, %c0_5], %13 {strides = array<i32>} : memref<16x1024xf32, #tpu.memory_space<vmem>>, vector<16x1024xf32>,
    return
  }
  func.func @transform_0(%arg0: i32) -> (i32, i32) {
    %c0_i32 = arith.constant 0 : i32
    %c0_i32_0 = arith.constant 0 : i32
    return %arg0, %c0_i32 : i32, i32
  }
  func.func @transform_1(%arg0: i32) -> (i32, i32) {
    %c0_i32 = arith.constant 0 : i32
    %c0_i32_0 = arith.constant 0 : i32
    return %arg0, %c0_i32 : i32, i32
  }
}

</mosaic_0001>

<bundles_post_ra>
// kernel: tpu_custom_call.1
= control target key start
LH: loop header
LB: loop body
LE: loop exit
PB: predicated region body
PF: predicated region fallthrough
CT: control target
= control target key end

     0   :  { %6 = vsyncpa [#allocation3], 0  ;;  %s564_s0 = inlined_call_operand.hbm [shape: f32[16,1024], index: 0, kind: input, shape index: {}]   ;;  %s565_s1 = inlined_call_operand.hbm [shape: f32[16,1024], index: 1, kind: output, shape index: {}]  }
   0x1   :  { %7 = vsyncpa [#allocation4], 0  ;;  %s360_s6 = smov [#allocation2]  }
   0x2   :  { %s13_s7 = sshll.u32 %s360_s6, 4  ;;  %s14_s7 = int_to_ptr.vmem [resolvable:$true] %s13_s7 }
   0x3   :  { %s324_s8 = scalar_lea.vmem %s14_s7, 2048  ;;  %p329_p1 = scmp.lt.s32.totalorder %s14_s7, %s14_s7 }
   0x4   :  { %p325_p0 = scmp.ne.s32.totalorder %s14_s7, %s324_s8  ;;  %p330_p2 = scmp.lt.s32.totalorder %s324_s8, %s324_s8 }
   0x6   :  { %p331_p3 = por %p330_p2, %p329_p1 }
   0x8   :  { %p332_p4 = pnand %p331_p3, %p325_p0 }
   0xa   :  { %335 = shalt.err (!%p332_p4)
}
   0xb   :  { %s361_s9 = smov 1024   ;;  %s362_s10 = smov 64  }
   0xc   :  { %19 = dma.hbm_to_vmem [thread:$0]  %s564_s0, 2048, %s14_s7, [#allocation3], %s361_s9, %s361_s9, %s362_s10  }
   0xd   :  { %356 = dma.done.wait [#allocation3], 2048  }
   0xe   :  { %357 = vsyncadd [#allocation3], 4294965248  ;;  %v380_v0 = vld [vmem:[#allocation2] sm:$0xff]  ;;  %v382_v1 = vld [vmem:[#allocation2 + $0x8] sm:$0xff]  ;;  %s363_s0 = smov [#allocation5]  }
   0xf   :  { %v384_v2 = vld [vmem:[#allocation2 + $0x10] sm:$0xff]  ;;  %v39_v3 = vmin.f32 %v380_v0, 20.0  ;;  %v40_v4 = vmin.f32 %v382_v1, 20.0  ;;  %v388_v5 = vld [vmem:[#allocation2 + $0x18] sm:$0xff]  ;;  %v390_v6 = vld [vmem:[#allocation2 + $0x20] sm:$0xff]  ;;  %vm167_vm0 = vcmp.gt.f32.partialorder %v380_v0, 20.0 }
  0x10   :  { %v41_v7 = vmin.f32 %v384_v2, 20.0  ;;  %v42_v8 = vmin.f32 %v388_v5, 20.0  ;;  %v394_v9 = vld [vmem:[#allocation2 + $0x28] sm:$0xff]  ;;  %v396_v10 = vld [vmem:[#allocation2 + $0x30] sm:$0xff]  ;;  %v43_v13 = vmin.f32 %v390_v6, 20.0  ;;  %v401_v19 = vld [vmem:[#allocation2 + $0x38] sm:$0xff] }
  0x11   :  { %v55_v11 = vmul.f32 1.442695, %v39_v3  ;;  %v57_v12 = vmul.f32 1.442695, %v40_v4  ;;  %v44_v16 = vmin.f32 %v394_v9, 20.0  ;;  %v45_v18 = vmin.f32 %v396_v10, 20.0 }
  0x12   :  { %v59_v14 = vmul.f32 1.442695, %v41_v7  ;;  %v61_v15 = vmul.f32 1.442695, %v42_v8  ;;  %v63_v17 = vmul.f32 1.442695, %v43_v13 }
  0x13   :  { %252 = vpow2.f32 %v55_v11  ;;  %v403_v20 = vld [vmem:[#allocation2 + $0x40] sm:$0xff]  ;;  %v65_v21 = vmul.f32 1.442695, %v44_v16  ;;  %v46_v22 = vmin.f32 %v401_v19, 20.0  ;;  %v406_v23 = vld [vmem:[#allocation2 + $0x48] sm:$0xff]  ;;  %v408_v24 = vld [vmem:[#allocation2 + $0x50] sm:$0xff] }
  0x14   :  { %254 = vpow2.f32 %v57_v12  ;;  %v67_v25 = vmul.f32 1.442695, %v45_v18  ;;  %v47_v26 = vmin.f32 %v403_v20, 20.0  ;;  %v411_v27 = vld [vmem:[#allocation2 + $0x58] sm:$0xff]  ;;  %v48_v29 = vmin.f32 %v406_v23, 20.0  ;;  %v414_v30 = vld [vmem:[#allocation2 + $0x60] sm:$0xff] }
  0x15   :  { %256 = vpow2.f32 %v59_v14  ;;  %v69_v28 = vmul.f32 1.442695, %v46_v22  ;;  %v49_v32 = vmin.f32 %v408_v24, 20.0  ;;  %v417_v33 = vld [vmem:[#allocation2 + $0x68] sm:$0xff]  ;;  %v50_v35 = vmin.f32 %v411_v27, 20.0  ;;  %v420_v36 = vld [vmem:[#allocation2 + $0x70] sm:$0xff] }
  0x16   :  { %258 = vpow2.f32 %v61_v15  ;;  %v71_v31 = vmul.f32 1.442695, %v47_v26  ;;  %v73_v34 = vmul.f32 1.442695, %v48_v29  ;;  %v51_v38 = vmin.f32 %v414_v30, 20.0  ;;  %v423_v39 = vld [vmem:[#allocation2 + $0x78] sm:$0xff] }
  0x17   :  { %260 = vpow2.f32 %v63_v17  ;;  %v75_v37 = vmul.f32 1.442695, %v49_v32  ;;  %v77_v40 = vmul.f32 1.442695, %v50_v35  ;;  %v52_v41 = vmin.f32 %v417_v33, 20.0  ;;  %s236_s13 = sshll.u32 %s363_s0, 4  ;;  %s237_s13 = int_to_ptr.vmem [resolvable:$true] %s236_s13 }
  0x18   :  { %262 = vpow2.f32 %v65_v21  ;;  %v79_v42 = vmul.f32 1.442695, %v51_v38  ;;  %v53_v43 = vmin.f32 %v420_v36, 20.0  ;;  %v54_v45 = vmin.f32 %v423_v39, 20.0  ;;  %s336_s14 = scalar_lea.vmem %s237_s13, 2048  ;;  %p341_p6 = scmp.lt.s32.totalorder %s237_s13, %s237_s13 }
  0x19   :  { %264 = vpow2.f32 %v67_v25  ;;  %v81_v44 = vmul.f32 1.442695, %v52_v41  ;;  %vm168_vm1 = vcmp.gt.f32.partialorder %v382_v1, 20.0  ;;  %vm169_vm2 = vcmp.gt.f32.partialorder %v384_v2, 20.0  ;;  %p337_p5 = scmp.ne.s32.totalorder %s237_s13, %s336_s14  ;;  %p342_p7 = scmp.lt.s32.totalorder %s336_s14, %s336_s14 }
  0x1a   :  { %266 = vpow2.f32 %v69_v28  ;;  %v83_v46 = vmul.f32 1.442695, %v53_v43  ;;  %v85_v47 = vmul.f32 1.442695, %v54_v45  ;;  %vm170_vm3 = vcmp.gt.f32.partialorder %v388_v5, 20.0 }
  0x1b   :  { %268 = vpow2.f32 %v71_v31  ;;  %vm171_vm4 = vcmp.gt.f32.partialorder %v390_v6, 20.0  ;;  %vm172_vm5 = vcmp.gt.f32.partialorder %v394_v9, 20.0  ;;  %vm173_vm6 = vcmp.gt.f32.partialorder %v396_v10, 20.0  ;;  %p343_p8 = por %p342_p7, %p341_p6 }
  0x1c   :  { %270 = vpow2.f32 %v73_v34  ;;  %vm174_vm7 = vcmp.gt.f32.partialorder %v401_v19, 20.0  ;;  %vm175_vm8 = vcmp.gt.f32.partialorder %v403_v20, 20.0  ;;  %vm176_vm9 = vcmp.gt.f32.partialorder %v406_v23, 20.0 }
  0x1d   :  { %272 = vpow2.f32 %v75_v37  ;;  %vm177_vm10 = vcmp.gt.f32.partialorder %v408_v24, 20.0  ;;  %vm178_vm11 = vcmp.gt.f32.partialorder %v411_v27, 20.0  ;;  %vm179_vm12 = vcmp.gt.f32.partialorder %v414_v30, 20.0  ;;  %p344_p9 = pnand %p343_p8, %p337_p5 }
  0x1e   :  { %274 = vpow2.f32 %v77_v40  ;;  %vm180_vm13 = vcmp.gt.f32.partialorder %v417_v33, 20.0  ;;  %vm181_vm14 = vcmp.gt.f32.partialorder %v420_v36, 20.0  ;;  %vm182_vm15 = vcmp.gt.f32.partialorder %v423_v39, 20.0 }
  0x1f   :  { %276 = vpow2.f32 %v79_v42 }
  0x20   :  { %v253_v48 = vpop.eup %252  ;;  %278 = vpow2.f32 %v81_v44 }
  0x21   :  { %v255_v49 = vpop.eup %254  ;;  %v87_v50 = vadd.f32 2.0, %v253_v48  ;;  %280 = vpow2.f32 %v83_v46 }
  0x22   :  { %v257_v51 = vpop.eup %256  ;;  %v88_v52 = vadd.f32 2.0, %v255_v49  ;;  %282 = vpow2.f32 %v85_v47 }
  0x23   :  { %v259_v53 = vpop.eup %258  ;;  %v428_v54 = vmul.f32 %v253_v48, %v87_v50  ;;  %v89_v55 = vadd.f32 2.0, %v257_v51 }
  0x24   :  { %v261_v56 = vpop.eup %260  ;;  %v430_v57 = vmul.f32 %v255_v49, %v88_v52  ;;  %v90_v58 = vadd.f32 2.0, %v259_v53 }
  0x25   :  { %v263_v59 = vpop.eup %262  ;;  %v119_v60 = vadd.f32 2.0, %v428_v54  ;;  %v433_v61 = vmul.f32 %v257_v51, %v89_v55  ;;  %v91_v62 = vadd.f32 2.0, %v261_v56 }
  0x26   :  { %v265_v63 = vpop.eup %264  ;;  %v120_v3 = vadd.f32 2.0, %v430_v57  ;;  %v436_v4 = vmul.f32 %v259_v53, %v90_v58  ;;  %v92_v7 = vadd.f32 2.0, %v263_v59 }
  0x27   :  { %v267_v8 = vpop.eup %266  ;;  %284 = vrcp.f32 %v119_v60  ;;  %v121_v11 = vadd.f32 2.0, %v433_v61  ;;  %v439_v12 = vmul.f32 %v261_v56, %v91_v62  ;;  %v93_v13 = vadd.f32 2.0, %v265_v63 }
  0x28   :  { %v269_v14 = vpop.eup %268  ;;  %286 = vrcp.f32 %v120_v3  ;;  %v122_v15 = vadd.f32 2.0, %v436_v4  ;;  %v442_v16 = vmul.f32 %v263_v59, %v92_v7  ;;  %v94_v17 = vadd.f32 2.0, %v267_v8 }
  0x29   :  { %v271_v18 = vpop.eup %270  ;;  %288 = vrcp.f32 %v121_v11  ;;  %v123_v21 = vadd.f32 2.0, %v439_v12  ;;  %v445_v22 = vmul.f32 %v265_v63, %v93_v13  ;;  %v95_v25 = vadd.f32 2.0, %v269_v14 }
  0x2a   :  { %v273_v26 = vpop.eup %272  ;;  %290 = vrcp.f32 %v122_v15  ;;  %v124_v28 = vadd.f32 2.0, %v442_v16  ;;  %v448_v29 = vmul.f32 %v267_v8, %v94_v17  ;;  %v96_v31 = vadd.f32 2.0, %v271_v18 }
  0x2b   :  { %v275_v32 = vpop.eup %274  ;;  %292 = vrcp.f32 %v123_v21  ;;  %v125_v34 = vadd.f32 2.0, %v445_v22  ;;  %v451_v35 = vmul.f32 %v269_v14, %v95_v25  ;;  %v97_v37 = vadd.f32 2.0, %v273_v26 }
  0x2c   :  { %v277_v38 = vpop.eup %276  ;;  %294 = vrcp.f32 %v124_v28  ;;  %v126_v40 = vadd.f32 2.0, %v448_v29  ;;  %v454_v41 = vmul.f32 %v271_v18, %v96_v31  ;;  %v98_v42 = vadd.f32 2.0, %v275_v32 }
  0x2d   :  { %v279_v43 = vpop.eup %278  ;;  %296 = vrcp.f32 %v125_v34  ;;  %v127_v44 = vadd.f32 2.0, %v451_v35  ;;  %v457_v45 = vmul.f32 %v273_v26, %v97_v37  ;;  %v99_v46 = vadd.f32 2.0, %v277_v38 }
  0x2e   :  { %v281_v47 = vpop.eup %280  ;;  %298 = vrcp.f32 %v126_v40  ;;  %v128_v48 = vadd.f32 2.0, %v454_v41  ;;  %v460_v49 = vmul.f32 %v275_v32, %v98_v42  ;;  %v100_v50 = vadd.f32 2.0, %v279_v43 }
  0x2f   :  { %v283_v51 = vpop.eup %282  ;;  %300 = vrcp.f32 %v127_v44  ;;  %v129_v52 = vadd.f32 2.0, %v457_v45  ;;  %v463_v53 = vmul.f32 %v277_v38, %v99_v46  ;;  %v101_v55 = vadd.f32 2.0, %v281_v47 }
  0x30   :  { %302 = vrcp.f32 %v128_v48  ;;  %v130_v56 = vadd.f32 2.0, %v460_v49  ;;  %v466_v58 = vmul.f32 %v279_v43, %v100_v50  ;;  %v102_v59 = vadd.f32 2.0, %v283_v51 }
  0x31   :  { %304 = vrcp.f32 %v129_v52  ;;  %v131_v60 = vadd.f32 2.0, %v463_v53  ;;  %v469_v62 = vmul.f32 %v281_v47, %v101_v55 }
  0x32   :  { %306 = vrcp.f32 %v130_v56  ;;  %v132_v63 = vadd.f32 2.0, %v466_v58  ;;  %v472_v3 = vmul.f32 %v283_v51, %v102_v59 }
  0x33   :  { %308 = vrcp.f32 %v131_v60  ;;  %v133_v7 = vadd.f32 2.0, %v469_v62 }
  0x34   :  { %v285_v8 = vpop.eup %284  ;;  %310 = vrcp.f32 %v132_v63  ;;  %v134_v11 = vadd.f32 2.0, %v472_v3 }
  0x35   :  { %v287_v13 = vpop.eup %286  ;;  %v136_v14 = vmul.f32 %v285_v8, %v428_v54  ;;  %312 = vrcp.f32 %v133_v7 }
  0x36   :  { %v289_v15 = vpop.eup %288  ;;  %v138_v17 = vmul.f32 %v287_v13, %v430_v57  ;;  %314 = vrcp.f32 %v134_v11 }
  0x37   :  { %v291_v18 = vpop.eup %290  ;;  %v183_v21 = vmul.f32 %v136_v14, %v380_v0  ;;  %v140_v25 = vmul.f32 %v289_v15, %v433_v61 }
  0x38   :  { %v293_v26 = vpop.eup %292  ;;  %v184_v28 = vmul.f32 %v138_v17, %v382_v1  ;;  %v142_v54 = vmul.f32 %v291_v18, %v436_v4 }
  0x39   :  { %v295_v31 = vpop.eup %294  ;;  %v199_v32 = vsel %vm167_vm0, %v380_v0, %v183_v21  ;;  %v185_v57 = vmul.f32 %v140_v25, %v384_v2  ;;  %v144_v34 = vmul.f32 %v293_v26, %v439_v12 }
  0x3a   :  { %v297_v37 = vpop.eup %296  ;;  %215 = vst [vmem:[#allocation5] sm:$0xff] %v199_v32  ;;  %v200_v61 = vsel %vm168_vm1, %v382_v1, %v184_v28  ;;  %v186_v38 = vmul.f32 %v142_v54, %v388_v5  ;;  %v146_v40 = vmul.f32 %v295_v31, %v442_v16 }
  0x3b   :  { %v299_v4 = vpop.eup %298  ;;  %216 = vst [vmem:[#allocation5 + $0x8] sm:$0xff] %v200_v61  ;;  %v201_v0 = vsel %vm169_vm2, %v384_v2, %v185_v57  ;;  %v187_v42 = vmul.f32 %v144_v34, %v390_v6  ;;  %v148_v12 = vmul.f32 %v297_v37, %v445_v22 }
  0x3c   :  { %v301_v43 = vpop.eup %300  ;;  %217 = vst [vmem:[#allocation5 + $0x10] sm:$0xff] %v201_v0  ;;  %v202_v1 = vsel %vm170_vm3, %v388_v5, %v186_v38  ;;  %v188_v44 = vmul.f32 %v146_v40, %v394_v9  ;;  %v150_v16 = vmul.f32 %v299_v4, %v448_v29 }
  0x3d   :  { %v303_v46 = vpop.eup %302  ;;  %218 = vst [vmem:[#allocation5 + $0x18] sm:$0xff] %v202_v1  ;;  %v203_v2 = vsel %vm171_vm4, %v390_v6, %v187_v42  ;;  %v189_v22 = vmul.f32 %v148_v12, %v396_v10  ;;  %v152_v47 = vmul.f32 %v301_v43, %v451_v35 }
  0x3e   :  { %v305_v48 = vpop.eup %304  ;;  %219 = vst [vmem:[#allocation5 + $0x20] sm:$0xff] %v203_v2  ;;  %v204_v5 = vsel %vm172_vm5, %v394_v9, %v188_v44  ;;  %v190_v29 = vmul.f32 %v150_v16, %v401_v19  ;;  %v154_v50 = vmul.f32 %v303_v46, %v454_v41 }
  0x3f   :  { %v307_v51 = vpop.eup %306  ;;  %220 = vst [vmem:[#allocation5 + $0x28] sm:$0xff] %v204_v5  ;;  %v205_v6 = vsel %vm173_vm6, %v396_v10, %v189_v22  ;;  %v191_v35 = vmul.f32 %v152_v47, %v403_v20  ;;  %v156_v52 = vmul.f32 %v305_v48, %v457_v45 }
  0x40   :  { %v309_v55 = vpop.eup %308  ;;  %221 = vst [vmem:[#allocation5 + $0x30] sm:$0xff] %v205_v6  ;;  %v206_v9 = vsel %vm174_vm7, %v401_v19, %v190_v29  ;;  %v192_v41 = vmul.f32 %v154_v50, %v406_v23  ;;  %v158_v56 = vmul.f32 %v307_v51, %v460_v49 }
  0x41   :  { %v311_v59 = vpop.eup %310  ;;  %222 = vst [vmem:[#allocation5 + $0x38] sm:$0xff] %v206_v9  ;;  %v207_v10 = vsel %vm175_vm8, %v403_v20, %v191_v35  ;;  %v193_v45 = vmul.f32 %v156_v52, %v408_v24  ;;  %v160_v60 = vmul.f32 %v309_v55, %v463_v53 }
  0x42   :  { %v313_v63 = vpop.eup %312  ;;  %223 = vst [vmem:[#allocation5 + $0x40] sm:$0xff] %v207_v10  ;;  %v208_v19 = vsel %vm176_vm9, %v406_v23, %v192_v41  ;;  %v194_v49 = vmul.f32 %v158_v56, %v411_v27  ;;  %v162_v7 = vmul.f32 %v311_v59, %v466_v58 }
  0x43   :  { %v315_v8 = vpop.eup %314  ;;  %224 = vst [vmem:[#allocation5 + $0x48] sm:$0xff] %v208_v19  ;;  %v209_v20 = vsel %vm177_vm10, %v408_v24, %v193_v45  ;;  %v195_v53 = vmul.f32 %v160_v60, %v414_v30  ;;  %v164_v11 = vmul.f32 %v313_v63, %v469_v62 }
  0x44   :  { %225 = vst [vmem:[#allocation5 + $0x50] sm:$0xff] %v209_v20  ;;  %v210_v23 = vsel %vm178_vm11, %v411_v27, %v194_v49  ;;  %v196_v13 = vmul.f32 %v162_v7, %v417_v33  ;;  %v166_v58 = vmul.f32 %v315_v8, %v472_v3 }
  0x45   :  { %226 = vst [vmem:[#allocation5 + $0x58] sm:$0xff] %v210_v23  ;;  %v211_v24 = vsel %vm179_vm12, %v414_v30, %v195_v53  ;;  %v197_v14 = vmul.f32 %v164_v11, %v420_v36 }
  0x46   :  { %227 = vst [vmem:[#allocation5 + $0x60] sm:$0xff] %v211_v24  ;;  %v212_v27 = vsel %vm180_vm13, %v417_v33, %v196_v13  ;;  %v198_v62 = vmul.f32 %v166_v58, %v423_v39 }
  0x47   :  { %228 = vst [vmem:[#allocation5 + $0x68] sm:$0xff] %v212_v27  ;;  %v213_v15 = vsel %vm181_vm14, %v420_v36, %v197_v14 }
  0x48   :  { %229 = vst [vmem:[#allocation5 + $0x70] sm:$0xff] %v213_v15  ;;  %v214_v3 = vsel %vm182_vm15, %v423_v39, %v198_v62 }
  0x49   :  { %230 = vst [vmem:[#allocation5 + $0x78] sm:$0xff] %v214_v3 }
  0x4a   :  { %347 = shalt.err (!%p344_p9)
}
  0x4b   :  { %242 = dma.vmem_to_hbm [thread:$0]  %s237_s13, 2048, %s565_s1, [#allocation4], %s361_s9, %s361_s9, %s362_s10  }
  0x4c   :  { %358 = dma.done.wait [#allocation4], 2048  }
  0x4d   :  { %359 = vsyncadd [#allocation4], 4294965248 }
  0x4e   :  { %246 = vsyncpa [#allocation3], 1 }
  0x4f   :  { %247 = vsyncpa [#allocation4], 1 }

</bundles_post_ra>
